<compile_context>
chip_gen: v7x
topology: tpu7x:2x2x1
jax: 0.10.0
libtpu: 0.0.40
codegen_flags: <defaults>
</compile_context>

<pallas_src>
import jax
import jax.numpy as jnp
from jax.experimental import pallas as pl
from jax.experimental.pallas import tpu as pltpu


def ann_score_kernel(x_ref, w1_ref, b1_ref, w2_ref, b2_ref, w3_ref, b3_ref, o_ref):
    # fc1 + relu   (tb, in) @ (in, 128) -> (tb, 128)
    h1 = jnp.dot(x_ref[...], w1_ref[...], preferred_element_type=jnp.float32)
    h1 = jnp.maximum(h1 + b1_ref[...], 0.0)
    # fc2 + relu   (tb, 128) @ (128, 64) -> (tb, 64)
    h2 = jnp.dot(h1, w2_ref[...], preferred_element_type=jnp.float32)
    h2 = jnp.maximum(h2 + b2_ref[...], 0.0)
    # fc3          (tb, 64) @ (64, 3) -> (tb, 3)
    # PyTorch applies the identical deterministic layer twice -> compute once, store once.
    y = jnp.dot(h2, w3_ref[...], preferred_element_type=jnp.float32) + b3_ref[...]
    o_ref[...] = y.astype(o_ref.dtype)


def ann_score_forward(x, params, *, block_b=1024):
    w1, b1, w2, b2, w3, b3 = params
    B, in_size = x.shape
    h1_dim = w1.shape[1]
    h2_dim = w2.shape[1]
    out_dim = w3.shape[1]

    # Batch tile: full batch when small (block == full dim satisfies the (8,128) tiling
    # rule), otherwise a multiple-of-8 tile so the pipeline double-buffers x / output tiles.
    tb = B if B <= block_b else block_b
    grid = (pl.cdiv(B, tb),)

    def resident(a):
        # Weights / biases: same block at every grid step -> fetched once, kept in VMEM.
        return pl.BlockSpec(a.shape, lambda i: (0,) * a.ndim)

    flops = 2 * B * (in_size * h1_dim + h1_dim * h2_dim + h2_dim * out_dim)
    bytes_accessed = (
        x.size * x.dtype.itemsize
        + sum(a.size * a.dtype.itemsize for a in params)
        + B * out_dim * 4
    )

    y = pl.pallas_call(
        ann_score_kernel,
        out_shape=jax.ShapeDtypeStruct((B, out_dim), jnp.float32),
        grid_spec=pltpu.PrefetchScalarGridSpec(
            num_scalar_prefetch=0,
            grid=grid,
            in_specs=[
                pl.BlockSpec((tb, in_size), lambda i: (i, 0)),  # x: streamed per batch tile
                resident(w1), resident(b1),
                resident(w2), resident(b2),
                resident(w3), resident(b3),
            ],
            out_specs=pl.BlockSpec((tb, out_dim), lambda i: (i, 0)),
        ),
        compiler_params=pltpu.CompilerParams(
            dimension_semantics=("parallel",),   # megacore sharding on v7x; harmless elsewhere
            vmem_limit_bytes=32 * 1024 * 1024,   # tiles + resident weights are far below this
        ),
        cost_estimate=pl.CostEstimate(
            flops=flops, transcendentals=0, bytes_accessed=bytes_accessed),
    )(x, w1, b1, w2, b2, w3, b3)
    # fc3(x) computed once; both PyTorch outputs are bit-identical.
    return y, y


def init_params(key, input_size):
    # Deterministic synthetic init (PyTorch-style uniform bounds); shapes match nn.Linear,
    # stored transposed as (in, out) so the kernel computes x @ W.
    def linear(k, fan_in, fan_out):
        k_w, k_b = jax.random.split(k)
        bound = 1.0 / jnp.sqrt(fan_in)
        w = jax.random.uniform(k_w, (fan_in, fan_out), jnp.float32, -bound, bound)
        b = jax.random.uniform(k_b, (1, fan_out), jnp.float32, -bound, bound)
        return w, b

    k1, k2, k3 = jax.random.split(key, 3)
    w1, b1 = linear(k1, input_size, 128)
    w2, b2 = linear(k2, 128, 64)
    w3, b3 = linear(k3, 64, 3)
    return (w1, b1, w2, b2, w3, b3)


def reference_forward(x, params):
    w1, b1, w2, b2, w3, b3 = params
    h1 = jnp.maximum(x @ w1 + b1, 0.0)
    h2 = jnp.maximum(h1 @ w2 + b2, 0.0)
    y = h2 @ w3 + b3
    return y, y


if __name__ == "__main__":
    key = jax.random.PRNGKey(0)
    k_param, k_x = jax.random.split(key)

    batch = 8
    input_size = 32

    params = init_params(k_param, input_size)
    x = jax.random.normal(k_x, (batch, input_size), jnp.float32)

    x1, x2 = ann_score_forward(x, params)
    jax.block_until_ready((x1, x2))

    r1, r2 = reference_forward(x, params)
    assert x1.shape == (batch, 3) and x2.shape == (batch, 3)
    assert jnp.allclose(x1, r1, atol=1e-5, rtol=1e-5)
    assert jnp.allclose(x2, r2, atol=1e-5, rtol=1e-5)
    assert jnp.array_equal(x1, x2)

    print("KERNEL_OK")
</pallas_src>

<mosaic_0001>
module attributes {stable_mosaic.version = 11 : i64} {
  func.func @ann_score_kernel(%arg0: i32, %arg1: memref<8x32xf32, #tpu.memory_space<vmem>>, %arg2: memref<32x128xf32, #tpu.memory_space<vmem>>, %arg3: memref<1x128xf32, #tpu.memory_space<vmem>>, %arg4: memref<128x64xf32, #tpu.memory_space<vmem>>, %arg5: memref<1x64xf32, #tpu.memory_space<vmem>>, %arg6: memref<64x3xf32, #tpu.memory_space<vmem>>, %arg7: memref<1x3xf32, #tpu.memory_space<vmem>>, %arg8: memref<8x3xf32, #tpu.memory_space<vmem>>) attributes {dimension_semantics = [#tpu.dimension_semantics<parallel>], iteration_bounds = array<i64: 1>, scalar_prefetch = 0 : i64, scratch_operands = 0 : i64, tpu.core_type = #tpu.core_type<tc>, window_params = [{transform_indices = @transform_0, window_bounds = array<i64: 8, 32>}, {pipeline_mode = #tpu.pipeline_mode<synchronous>, transform_indices = @transform_1, window_bounds = array<i64: 32, 128>}, {pipeline_mode = #tpu.pipeline_mode<synchronous>, transform_indices = @transform_2, window_bounds = array<i64: 1, 128>}, {pipeline_mode = #tpu.pipeline_mode<synchronous>, transform_indices = @transform_3, window_bounds = array<i64: 128, 64>}, {pipeline_mode = #tpu.pipeline_mode<synchronous>, transform_indices = @transform_4, window_bounds = array<i64: 1, 64>}, {pipeline_mode = #tpu.pipeline_mode<synchronous>, transform_indices = @transform_5, window_bounds = array<i64: 64, 3>}, {pipeline_mode = #tpu.pipeline_mode<synchronous>, transform_indices = @transform_6, window_bounds = array<i64: 1, 3>}, {transform_indices = @transform_7, window_bounds = array<i64: 8, 3>}]} {
    %c0 = arith.constant 0 : index
    %c0_0 = arith.constant 0 : index
    %0 = vector.load %arg1[%c0, %c0_0] : memref<8x32xf32, #tpu.memory_space<vmem>>, vector<8x32xf32>
    %c0_1 = arith.constant 0 : index
    %c0_2 = arith.constant 0 : index
    %1 = vector.load %arg2[%c0_1, %c0_2] : memref<32x128xf32, #tpu.memory_space<vmem>>, vector<32x128xf32>
    %cst = arith.constant dense<0.000000e+00> : vector<8x128xf32>
    %2 = tpu.matmul %0, %1, %cst {dimension_numbers = #tpu.dot_dimension_numbers<[1], [0], [0], [1], [0, 0, 1, 1], [], []>} : vector<8x32xf32>, vector<32x128xf32>, vector<8x128xf32> -> vector<8x128xf32>
    %c0_3 = arith.constant 0 : index
    %c0_4 = arith.constant 0 : index
    %3 = vector.load %arg3[%c0_3, %c0_4] : memref<1x128xf32, #tpu.memory_space<vmem>>, vector<1x128xf32>
    %4 = vector.broadcast %3 : vector<1x128xf32> to vector<8x128xf32>
    %5 = arith.addf %2, %4 : vector<8x128xf32>
    %cst_5 = arith.constant 0.000000e+00 : f32
    %6 = vector.broadcast %cst_5 : f32 to vector<8x128xf32>
    %7 = arith.maximumf %5, %6 : vector<8x128xf32>
    %c0_6 = arith.constant 0 : index
    %c0_7 = arith.constant 0 : index
    %8 = vector.load %arg4[%c0_6, %c0_7] : memref<128x64xf32, #tpu.memory_space<vmem>>, vector<128x64xf32>
    %cst_8 = arith.constant dense<0.000000e+00> : vector<8x64xf32>
    %9 = tpu.matmul %7, %8, %cst_8 {dimension_numbers = #tpu.dot_dimension_numbers<[1], [0], [0], [1], [0, 0, 1, 1], [], []>} : vector<8x128xf32>, vector<128x64xf32>, vector<8x64xf32> -> vector<8x64xf32>
    %c0_9 = arith.constant 0 : index
    %c0_10 = arith.constant 0 : index
    %10 = vector.load %arg5[%c0_9, %c0_10] : memref<1x64xf32, #tpu.memory_space<vmem>>, vector<1x64xf32>
    %11 = vector.broadcast %10 : vector<1x64xf32> to vector<8x64xf32>
    %12 = arith.addf %9, %11 : vector<8x64xf32>
    %cst_11 = arith.constant 0.000000e+00 : f32
    %13 = vector.broadcast %cst_11 : f32 to vector<8x64xf32>
    %14 = arith.maximumf %12, %13 : vector<8x64xf32>
    %c0_12 = arith.constant 0 : index
    %c0_13 = arith.constant 0 : index
    %15 = vector.load %arg6[%c0_12, %c0_13] : memref<64x3xf32, #tpu.memory_space<vmem>>, vector<64x3xf32>
    %cst_14 = arith.constant dense<0.000000e+00> : vector<8x3xf32>
    %16 = tpu.matmul %14, %15, %cst_14 {dimension_numbers = #tpu.dot_dimension_numbers<[1], [0], [0], [1], [0, 0, 1, 1], [], []>} : vector<8x64xf32>, vector<64x3xf32>, vector<8x3xf32> -> vector<8x3xf32>
    %c0_15 = arith.constant 0 : index
    %c0_16 = arith.constant 0 : index
    %17 = vector.load %arg7[%c0_15, %c0_16] : memref<1x3xf32, #tpu.memory_space<vmem>>, vector<1x3xf32>
    %18 = vector.broadcast %17 : vector<1x3xf32> to vector<8x3xf32>
    %19 = arith.addf %16, %18 : vector<8x3xf32>
    %c0_17 = arith.constant 0 : index
    %c0_18 = arith.constant 0 : index
    %20 = vector.load %arg8[%c0_17, %c0_18] : memref<8x3xf32, #tpu.memory_space<vmem>>, vector<8x3xf32>
    tpu.vector_store %arg8[%c0_17, %c0_18], %19 {strides = array<i32>} : memref<8x3xf32, #tpu.memory_space<vmem>>, vector<8x3xf32>,
    return
  }
  func.func @transform_0(%arg0: i32) -> (i32, i32) {
    %c0_i32 = arith.constant 0 : i32
    %c0_i32_0 = arith.constant 0 : i32
    return %arg0, %c0_i32 : i32, i32
  }
  func.func @transform_1(%arg0: i32) -> (i32, i32) {
    %c0_i32 = arith.constant 0 : i32
    %c0_i32_0 = arith.constant 0 : i32
    %c0_i32_1 = arith.constant 0 : i32
    return %c0_i32, %c0_i32_0 : i32, i32
  }
  func.func @transform_2(%arg0: i32) -> (i32, i32) {
    %c0_i32 = arith.constant 0 : i32
    %c0_i32_0 = arith.constant 0 : i32
    %c0_i32_1 = arith.constant 0 : i32
    return %c0_i32, %c0_i32_0 : i32, i32
  }
  func.func @transform_3(%arg0: i32) -> (i32, i32) {
    %c0_i32 = arith.constant 0 : i32
    %c0_i32_0 = arith.constant 0 : i32
    %c0_i32_1 = arith.constant 0 : i32
    return %c0_i32, %c0_i32_0 : i32, i32
  }
  func.func @transform_4(%arg0: i32) -> (i32, i32) {
    %c0_i32 = arith.constant 0 : i32
    %c0_i32_0 = arith.constant 0 : i32
    %c0_i32_1 = arith.constant 0 : i32
    return %c0_i32, %c0_i32_0 : i32, i32
  }
  func.func @transform_5(%arg0: i32) -> (i32, i32) {
    %c0_i32 = arith.constant 0 : i32
    %c0_i32_0 = arith.constant 0 : i32
    %c0_i32_1 = arith.constant 0 : i32
    return %c0_i32, %c0_i32_0 : i32, i32
  }
  func.func @transform_6(%arg0: i32) -> (i32, i32) {
    %c0_i32 = arith.constant 0 : i32
    %c0_i32_0 = arith.constant 0 : i32
    %c0_i32_1 = arith.constant 0 : i32
    return %c0_i32, %c0_i32_0 : i32, i32
  }
  func.func @transform_7(%arg0: i32) -> (i32, i32) {
    %c0_i32 = arith.constant 0 : i32
    %c0_i32_0 = arith.constant 0 : i32
    return %arg0, %c0_i32 : i32, i32
  }
}

</mosaic_0001>

<bundles_post_ra>
// kernel: tpu_custom_call.1
= control target key start
LH: loop header
LB: loop body
LE: loop exit
PB: predicated region body
PF: predicated region fallthrough
CT: control target
= control target key end

     0   :  { %v448_v0 = vmov 0.0|0.0   ;;  %vm449_vm0 = vmmov 0   ;;  %v450_v4 = vmov 0.0   ;;  %vm38_vm1 = vcmask 261120   ;;  %s607_s1 = inlined_call_operand.vmem [shape: f32[32,128], index: 1, kind: input, shape index: {}]   ;;  %s608_s3 = inlined_call_operand.vmem [shape: f32[128,64], index: 3, kind: input, shape index: {}]   ;;  %s609_s0 = inlined_call_operand.vmem [shape: f32[8,32], index: 0, kind: input, shape index: {}]   ;;  %s610_s5 = inlined_call_operand.vmem [shape: f32[64,3], index: 5, kind: input, shape index: {}]   ;;  %s611_s2 = inlined_call_operand.vmem [shape: f32[1,128], index: 2, kind: input, shape index: {}]   ;;  %s612_s4 = inlined_call_operand.vmem [shape: f32[1,64], index: 4, kind: input, shape index: {}]   ;;  %s613_s6 = inlined_call_operand.vmem [shape: f32[1,3], index: 6, kind: input, shape index: {}]   ;;  %s614_s7 = inlined_call_operand.vmem [shape: f32[8,3], index: 7, kind: output, shape index: {}]  }
   0x1   :  { %403 = vmatprep.subr.bf16.mxu0 %v448_v0  ;;  %v27_v1 = vld [vmem:[%s607_s1] sm:$0xff]  ;;  %v28_v2 = vld [vmem:[%s607_s1 + $0x8] sm:$0xff]  ;;  %v29_v3 = vld [vmem:[%s607_s1 + $0x10] sm:$0xff]  ;;  %346 = vmatprep.mubr.msk.f32.mxu0 %vm449_vm0, %v450_v4  ;;  %vm222_vm2 = vcmask 523264   ;;  %vm296_vm3 = vcmask 23552  }
   0x2   :  { %v404_v5 = vpack.c.bf16 %v28_v2, %v27_v1  ;;  %v30_v6 = vld [vmem:[%s607_s1 + $0x18] sm:$0xff]  ;;  %409 = vmatprep.subr.bf16.mxu1 %v448_v0  ;;  %v113_v7 = vld [vmem:[%s608_s3] sm:$0xff]  ;;  %381 = vmatprep.mubr.msk.f32.mxu1 %vm449_vm0, %v450_v4  ;;  %v114_v8 = vld [vmem:[%s608_s3 + $0x8] sm:$0xff] }
   0x3   :  { %v115_v9 = vld [vmem:[%s608_s3 + $0x10] sm:$0xff]  ;;  %v116_v10 = vld [vmem:[%s608_s3 + $0x18] sm:$0xff]  ;;  %v407_v11 = vpack.c.bf16 %v30_v6, %v29_v3  ;;  %v410_v12 = vpack.c.bf16 %v114_v8, %v113_v7  ;;  %v117_v14 = vld [vmem:[%s608_s3 + $0x20] sm:$0xff] }
   0x4   :  { %405 = vmatpush3.bf16.msra.mxu0 %v404_v5  ;;  %v413_v13 = vpack.c.bf16 %v116_v10, %v115_v9  ;;  %v118_v15 = vld [vmem:[%s608_s3 + $0x28] sm:$0xff]  ;;  %v26_v16 = vld [vmem:[%s609_s0] sm:$0xff]  ;;  %v119_v18 = vld [vmem:[%s608_s3 + $0x30] sm:$0xff] }
   0x5   :  { %406 = vmatprep.subr.bf16.mxu0 %v448_v0  ;;  %411 = vmatpush3.bf16.msra.mxu1 %v410_v12  ;;  %v416_v17 = vpack.c.bf16 %v118_v15, %v117_v14  ;;  %v120_v19 = vld [vmem:[%s608_s3 + $0x38] sm:$0xff]  ;;  %v121_v21 = vld [vmem:[%s608_s3 + $0x40] sm:$0xff]  ;;  %v122_v22 = vld [vmem:[%s608_s3 + $0x48] sm:$0xff] }
   0x6   :  { %412 = vmatprep.subr.bf16.mxu1 %v448_v0  ;;  %v419_v20 = vpack.c.bf16 %v120_v19, %v119_v18  ;;  %v422_v23 = vpack.c.bf16 %v122_v22, %v121_v21  ;;  %v123_v24 = vld [vmem:[%s608_s3 + $0x50] sm:$0xff]  ;;  %v124_v25 = vld [vmem:[%s608_s3 + $0x58] sm:$0xff]  ;;  %v125_v27 = vld [vmem:[%s608_s3 + $0x60] sm:$0xff] }
   0x7   :  { %v425_v26 = vpack.c.bf16 %v124_v25, %v123_v24  ;;  %v126_v28 = vld [vmem:[%s608_s3 + $0x68] sm:$0xff]  ;;  %v127_v30 = vld [vmem:[%s608_s3 + $0x70] sm:$0xff]  ;;  %v128_v31 = vld [vmem:[%s608_s3 + $0x78] sm:$0xff] }
   0x8   :  { %408 = vmatpush3.bf16.msra.mxu0 %v407_v11  ;;  %v428_v29 = vpack.c.bf16 %v126_v28, %v125_v27  ;;  %v431_v32 = vpack.c.bf16 %v128_v31, %v127_v30  ;;  %v207_v33 = vld [vmem:[%s610_s5] sm:$0xff]  ;;  %v208_v34 = vld [vmem:[%s610_s5 + $0x8] sm:$0xff]  ;;  %v209_v35 = vld [vmem:[%s610_s5 + $0x10] sm:$0xff] }
   0x9   :  { %433 = vmatprep.subr.bf16.mxu0 %v448_v0  ;;  %414 = vmatpush3.bf16.msra.mxu1 %v413_v13  ;;  %v434_v36 = vpack.c.bf16 %v208_v34, %v207_v33  ;;  %v210_v37 = vld [vmem:[%s610_s5 + $0x18] sm:$0xff]  ;;  %v211_v39 = vld [vmem:[%s610_s5 + $0x20] sm:$0xff]  ;;  %v212_v40 = vld [vmem:[%s610_s5 + $0x28] sm:$0xff] }
   0xa   :  { %415 = vmatprep.subr.bf16.mxu1 %v448_v0  ;;  %v437_v38 = vpack.c.bf16 %v210_v37, %v209_v35  ;;  %v440_v41 = vpack.c.bf16 %v212_v40, %v211_v39  ;;  %v302_v42 = vld [vmem:[%s611_s2] ss:$0 sm:$0xff]  ;;  %v213_v47 = vld [vmem:[%s610_s5 + $0x30] sm:$0xff]  ;;  %v214_v48 = vld [vmem:[%s610_s5 + $0x38] sm:$0xff] }
   0xb   :  { %347 = vmatmul.mubr.msk.f32.vlgmr.msra.gmra.mrb[0].mxu0 %vm38_vm1, %v26_v16  ;;  %v443_v49 = vpack.c.bf16 %v214_v48, %v213_v47  ;;  %v304_v50 = vld [vmem:[%s612_s4] ss:$0 sm:$0xff] }
   0xc   :  { %400 = vmatprep.mubr.msk.f32.mxu0 %vm449_vm0, %v450_v4  ;;  %435 = vmatpush3.bf16.msra.mxu0 %v434_v36  ;;  %v305_v55 = vld [vmem:[%s613_s6] ss:$0 sm:$0xff] }
   0xd   :  { %417 = vmatpush3.bf16.msra.mxu1 %v416_v17  ;;  %436 = vmatprep.subr.bf16.mxu0 %v448_v0 }
   0xe   :  { %418 = vmatprep.subr.bf16.mxu1 %v448_v0 }
  0x10   :  { %438 = vmatpush3.bf16.msra.mxu0 %v437_v38 }
  0x11   :  { %420 = vmatpush3.bf16.msra.mxu1 %v419_v20  ;;  %439 = vmatprep.subr.bf16.mxu0 %v448_v0 }
  0x12   :  { %421 = vmatprep.subr.bf16.mxu1 %v448_v0 }
  0x14   :  { %441 = vmatpush3.bf16.msra.mxu0 %v440_v41 }
  0x15   :  { %423 = vmatpush3.bf16.msra.mxu1 %v422_v23  ;;  %442 = vmatprep.subr.bf16.mxu0 %v448_v0 }
  0x16   :  { %424 = vmatprep.subr.bf16.mxu1 %v448_v0 }
  0x18   :  { %444 = vmatpush3.bf16.msra.mxu0 %v443_v49 }
  0x19   :  { %426 = vmatpush3.bf16.msra.mxu1 %v425_v26 }
  0x1a   :  { %427 = vmatprep.subr.bf16.mxu1 %v448_v0 }
  0x1d   :  { %429 = vmatpush3.bf16.msra.mxu1 %v428_v29 }
  0x1e   :  { %430 = vmatprep.subr.bf16.mxu1 %v448_v0 }
  0x21   :  { %432 = vmatpush3.bf16.msra.mxu1 %v431_v32 }
  0xde   :  { %v108_v43 = vpop.f32.mrb[0].mxu0 }
  0xdf   :  { %v109_v44 = vadd.f32 %v302_v42, %v108_v43  ;;  %v348_v45 = vpop.f32.mrb[1].mxu0 }
  0xe1   :  { %v112_v46 = vmax.f32 %v109_v44, 0.0 }
  0xe3   :  { %382 = vmatmul.mubr.f32.vlgmr.msra.gmra.mrb[0].mxu1 %v112_v46 }
 0x1b6   :  { %v202_v51 = vpop.f32.mrb[0].mxu1 }
 0x1b7   :  { %v203_v52 = vadd.f32 %v304_v50, %v202_v51  ;;  %v383_v53 = vpop.f32.mrb[1].mxu1 }
 0x1b9   :  { %v206_v54 = vmax.f32 %v203_v52, 0.0 }
 0x1bb   :  { %401 = vmatmul.mubr.msk.f32.vlgmr.msra.gmra.mrb[2].mxu0 %vm222_vm2, %v206_v54 }
 0x28e   :  { %v292_v56 = vpop.f32.mrb[2].mxu0 }
 0x28f   :  { %v293_v57 = vadd.f32 %v305_v55, %v292_v56  ;;  %v402_v58 = vpop.f32.mrb[3].mxu0 }
 0x291   :  { %297 = vst.msk [vmem:[%s614_s7] sm:$0xff] %vm296_vm3, %v293_v57 }

</bundles_post_ra>
